<compile_context>
chip_gen: v5e
topology: v5e:2x2
jax: 0.10.0
libtpu: 0.0.40
codegen_flags: <defaults>
</compile_context>

<pallas_src>
import numpy as np
import jax
import jax.numpy as jnp
from jax.experimental import pallas as pl
from jax.experimental.pallas import tpu as pltpu


# ----------------------------------------------------------------------------
# Fused kernel: out = relu(z @ W1^T + b1) @ W2^T + b2
# w1b = [W1^T ; b1]  (D+1, H),  w2b = [W2^T ; b2]  (H+1, E)   -- bf16
# ----------------------------------------------------------------------------
def _projection_kernel(z_ref, w1b_ref, w2b_ref, o_ref):
    d = z_ref.shape[-1]           # latent dim (K of first matmul)
    hdim = w1b_ref.shape[-1]      # hidden dim (256)

    # fc1 on the MXU, f32 accumulation.
    h = jnp.dot(z_ref[...], w1b_ref[:d, :], preferred_element_type=jnp.float32)
    # bias-add + ReLU in f32 on the accumulator (bias = last row of w1b).
    h = jnp.maximum(h + w1b_ref[d:d + 1, :].astype(jnp.float32), 0.0)

    # fc2: cast activation back to the weight dtype for the MXU, accumulate f32.
    out = jnp.dot(h.astype(w2b_ref.dtype), w2b_ref[:hdim, :],
                  preferred_element_type=jnp.float32)
    out = out + w2b_ref[hdim:hdim + 1, :].astype(jnp.float32)
    o_ref[...] = out.astype(o_ref.dtype)


# ----------------------------------------------------------------------------
# One-time parameter layout prep (NOT per forward call).
# ----------------------------------------------------------------------------
def prepare_params(w1, b1, w2, b2, compute_dtype=jnp.bfloat16):
    """Transpose PyTorch (out,in) weights to (in,out), append the bias as the
    final row, and cast to the MXU input dtype."""
    w1t = jnp.asarray(w1, jnp.float32).T                       # (D, H)
    w2t = jnp.asarray(w2, jnp.float32).T                       # (H, E)
    w1b = jnp.concatenate([w1t, jnp.asarray(b1, jnp.float32)[None, :]], axis=0)
    w2b = jnp.concatenate([w2t, jnp.asarray(b2, jnp.float32)[None, :]], axis=0)
    return {"w1b": w1b.astype(compute_dtype), "w2b": w2b.astype(compute_dtype)}


# ----------------------------------------------------------------------------
# Forward wrapper.
# ----------------------------------------------------------------------------
def projection_forward(z, params, block_b=128):
    """z: (B, D) float32.  block_b must be a multiple of 8 (default 128)."""
    w1b, w2b = params["w1b"], params["w2b"]
    B, d = z.shape
    d_aug, hdim = w1b.shape          # (D+1, H)
    e_dim = w2b.shape[1]             # E
    z = z.astype(w1b.dtype)          # bf16 MXU input; tiny cast, fuses upstream

    if B <= block_b:
        # Latency path: single shot, no grid / pipeline machinery; everything
        # (~41 KB weights + a few KB activations) lives wholly in VMEM.
        return pl.pallas_call(
            _projection_kernel,
            out_shape=jax.ShapeDtypeStruct((B, e_dim), jnp.float32),
            in_specs=[pl.BlockSpec(memory_space=pltpu.MemorySpace.VMEM)] * 3,
            out_specs=pl.BlockSpec(memory_space=pltpu.MemorySpace.VMEM),
        )(z, w1b, w2b)

    # Throughput path: tile the batch; pad to a multiple of block_b so every
    # grid step sees a full tile (rows are independent -> padding is harmless).
    # NOTE: for very large B one could also present the output lane-dense
    # (E=64 < 128 lanes -> masked stores), but that is a minor win.
    n_blocks = pl.cdiv(B, block_b)
    b_pad = n_blocks * block_b
    if b_pad != B:
        z = jnp.pad(z, ((0, b_pad - B), (0, 0)))
    out = pl.pallas_call(
        _projection_kernel,
        out_shape=jax.ShapeDtypeStruct((b_pad, e_dim), jnp.float32),
        grid=(n_blocks,),
        in_specs=[
            pl.BlockSpec((block_b, d), lambda i: (i, 0)),       # z tile
            pl.BlockSpec((d_aug, hdim), lambda i: (0, 0)),      # w1b (resident)
            pl.BlockSpec((hdim + 1, e_dim), lambda i: (0, 0)),  # w2b (resident)
        ],
        out_specs=pl.BlockSpec((block_b, e_dim), lambda i: (i, 0)),
        compiler_params=pltpu.CompilerParams(
            dimension_semantics=("parallel",),   # shards batch across TCs (v7x)
        ),
    )(z, w1b, w2b)
    return out[:B]


# ----------------------------------------------------------------------------
# Pure-JAX reference (mirrors the PyTorch module exactly, f32).
# ----------------------------------------------------------------------------
def projection_ref(z, w1, b1, w2, b2):
    h = jax.nn.relu(z @ w1.T + b1)
    return h @ w2.T + b2


# ----------------------------------------------------------------------------
if __name__ == "__main__":
    LATENT_DIM, HIDDEN_DIM, EMBEDDING_DIM, BATCH = 32, 256, 64, 2

    key = jax.random.PRNGKey(0)
    k = jax.random.split(key, 6)

    # PyTorch nn.Linear layout: weight (out_features, in_features), bias (out,)
    w1 = jax.random.normal(k[0], (HIDDEN_DIM, LATENT_DIM), jnp.float32) * 0.05
    b1 = jax.random.normal(k[1], (HIDDEN_DIM,), jnp.float32) * 0.05
    w2 = jax.random.normal(k[2], (EMBEDDING_DIM, HIDDEN_DIM), jnp.float32) * 0.05
    b2 = jax.random.normal(k[3], (EMBEDDING_DIM,), jnp.float32) * 0.05
    z = jax.random.normal(k[4], (BATCH, LATENT_DIM), jnp.float32)

    params = prepare_params(w1, b1, w2, b2)

    # --- small-batch (latency) path: matches the module's B=2 usage ---
    out = jax.block_until_ready(projection_forward(z, params))
    assert out.shape == (BATCH, EMBEDDING_DIM), out.shape
    ref = jax.block_until_ready(projection_ref(z, w1, b1, w2, b2))
    np.testing.assert_allclose(np.asarray(out), np.asarray(ref),
                               rtol=2e-2, atol=2e-2)   # bf16 weights/inputs

    # --- large, non-divisible batch (throughput) path: exercises the
    #     pl.cdiv padding + batch-tiled grid fallback ---
    z_big = jax.random.normal(k[5], (260, LATENT_DIM), jnp.float32)
    out_big = jax.block_until_ready(projection_forward(z_big, params, block_b=128))
    assert out_big.shape == (260, EMBEDDING_DIM), out_big.shape
    ref_big = jax.block_until_ready(projection_ref(z_big, w1, b1, w2, b2))
    np.testing.assert_allclose(np.asarray(out_big), np.asarray(ref_big),
                               rtol=2e-2, atol=2e-2)

    print("KERNEL_OK")
</pallas_src>

<mosaic_0001>
module attributes {stable_mosaic.version = 11 : i64} {
  func.func @_projection_kernel(%arg0: memref<2x32xbf16, #tpu.memory_space<vmem>>, %arg1: memref<33x256xbf16, #tpu.memory_space<vmem>>, %arg2: memref<257x64xbf16, #tpu.memory_space<vmem>>, %arg3: memref<2x64xf32, #tpu.memory_space<vmem>>) attributes {dimension_semantics = [], scalar_prefetch = 0 : i64, scratch_operands = 0 : i64, tpu.core_type = #tpu.core_type<tc>} {
    %c0 = arith.constant 0 : index
    %c0_0 = arith.constant 0 : index
    %0 = vector.load %arg0[%c0, %c0_0] : memref<2x32xbf16, #tpu.memory_space<vmem>>, vector<2x32xbf16>
    %c0_1 = arith.constant 0 : index
    %c0_2 = arith.constant 0 : index
    %1 = vector.load %arg1[%c0_1, %c0_2] : memref<33x256xbf16, #tpu.memory_space<vmem>>, vector<32x256xbf16>
    %cst = arith.constant dense<0.000000e+00> : vector<2x256xf32>
    %2 = tpu.matmul %0, %1, %cst {dimension_numbers = #tpu.dot_dimension_numbers<[1], [0], [0], [1], [0, 0, 1, 1], [], []>} : vector<2x32xbf16>, vector<32x256xbf16>, vector<2x256xf32> -> vector<2x256xf32>
    %c32 = arith.constant 32 : index
    %c0_3 = arith.constant 0 : index
    %3 = vector.load %arg1[%c32, %c0_3] : memref<33x256xbf16, #tpu.memory_space<vmem>>, vector<1x256xbf16>
    %4 = arith.extf %3 : vector<1x256xbf16> to vector<1x256xf32>
    %5 = vector.broadcast %4 : vector<1x256xf32> to vector<2x256xf32>
    %6 = arith.addf %2, %5 : vector<2x256xf32>
    %cst_4 = arith.constant 0.000000e+00 : f32
    %7 = vector.broadcast %cst_4 : f32 to vector<2x256xf32>
    %8 = arith.maximumf %6, %7 : vector<2x256xf32>
    %9 = arith.truncf %8 : vector<2x256xf32> to vector<2x256xbf16>
    %c0_5 = arith.constant 0 : index
    %c0_6 = arith.constant 0 : index
    %10 = vector.load %arg2[%c0_5, %c0_6] : memref<257x64xbf16, #tpu.memory_space<vmem>>, vector<256x64xbf16>
    %cst_7 = arith.constant dense<0.000000e+00> : vector<2x64xf32>
    %11 = tpu.matmul %9, %10, %cst_7 {dimension_numbers = #tpu.dot_dimension_numbers<[1], [0], [0], [1], [0, 0, 1, 1], [], []>} : vector<2x256xbf16>, vector<256x64xbf16>, vector<2x64xf32> -> vector<2x64xf32>
    %c256 = arith.constant 256 : index
    %c0_8 = arith.constant 0 : index
    %12 = vector.load %arg2[%c256, %c0_8] : memref<257x64xbf16, #tpu.memory_space<vmem>>, vector<1x64xbf16>
    %13 = arith.extf %12 : vector<1x64xbf16> to vector<1x64xf32>
    %14 = vector.broadcast %13 : vector<1x64xf32> to vector<2x64xf32>
    %15 = arith.addf %11, %14 : vector<2x64xf32>
    %c0_9 = arith.constant 0 : index
    %c0_10 = arith.constant 0 : index
    %16 = vector.load %arg3[%c0_9, %c0_10] : memref<2x64xf32, #tpu.memory_space<vmem>>, vector<2x64xf32>
    tpu.vector_store %arg3[%c0_9, %c0_10], %15 {strides = array<i32>} : memref<2x64xf32, #tpu.memory_space<vmem>>, vector<2x64xf32>,
    return
  }
}

</mosaic_0001>

<bundles_post_ra>
// kernel: tpu_custom_call.1
= control target key start
LH: loop header
LB: loop body
LE: loop exit
PB: predicated region body
PF: predicated region fallthrough
CT: control target
= control target key end

     0   :  { %vm46_vm0 = vcmask 261120   ;;  %s489_s0 = inlined_call_operand.vmem [shape: bf16[2,32], index: 0, kind: input, shape index: {}]   ;;  %s490_s1 = inlined_call_operand.vmem [shape: bf16[33,256], index: 1, kind: input, shape index: {}]   ;;  %s491_s2 = inlined_call_operand.vmem [shape: bf16[257,64], index: 2, kind: input, shape index: {}]   ;;  %s492_s3 = inlined_call_operand.hbm [shape: f32[2,64], index: 3, kind: output, shape index: {}]  }
   0x1   :  { %v265_v0 = vld [vmem:[%s490_s1 + $0x10] sm:$0xf]  ;;  %v340_v1 = vld [vmem:[%s490_s1 + $0x14] sm:$0xf0]  ;;  %v339_v2 = vld [vmem:[%s490_s1 + $0x14] sm:$0xf] }
   0x2   :  { %v266_v3 = vor.u32 %v340_v1, %v265_v0  ;;  %v267_v4 = vld [vmem:[%s490_s1 + $0x18] sm:$0xf0]  ;;  %v257_v5 = vld [vmem:[%s490_s1] sm:$0xf]  ;;  %v338_v6 = vld [vmem:[%s490_s1 + $0x4] sm:$0xf0] }
   0x3   :  { %v270_v7 = vor.u32 %v339_v2, %v267_v4  ;;  %v337_v8 = vld [vmem:[%s490_s1 + $0x4] sm:$0xf]  ;;  %v259_v9 = vld [vmem:[%s490_s1 + $0x8] sm:$0xf0]  ;;  %v258_v10 = vor.u32 %v338_v6, %v257_v5  ;;  %v348_v11 = vld [vmem:[%s491_s2 + $0x38] sm:$0xff] }
   0x4   :  { %56 = vmatpush.bf16.msra.mxu0 %v266_v3  ;;  %v356_v12 = vld [vmem:[%s491_s2 + $0x78] sm:$0xff]  ;;  %v262_v13 = vor.u32 %v337_v8, %v259_v9  ;;  %211 = vmatpush.bf16.msra.mxu2 %v348_v11  ;;  %v347_v14 = vld [vmem:[%s491_s2 + $0x30] sm:$0xff]  ;;  %v16_v16 = vld [vmem:[%s489_s0] sm:$0x1] }
   0x5   :  { %69 = vmatpush.bf16.msra.mxu1 %v270_v7  ;;  %224 = vmatpush.bf16.msra.mxu3 %v356_v12  ;;  %v355_v15 = vld [vmem:[%s491_s2 + $0x70] sm:$0xff] }
   0x8   :  { %57 = vmatpush.bf16.msra.mxu0 %v258_v10 }
   0x9   :  { %8 = vsyncpa [#allocation3], 0  ;;  %70 = vmatpush.bf16.msra.mxu1 %v262_v13  ;;  %212 = vmatpush.bf16.msra.mxu2 %v347_v14  ;;  %v346_v17 = vld [vmem:[%s491_s2 + $0x28] sm:$0xff]  ;;  %v345_v19 = vld [vmem:[%s491_s2 + $0x20] sm:$0xff]  ;;  %s246_s14 = sshll.u32 %s492_s3, 4  ;;  %vm237_vm1 = vcmask 517120   ;;  %s247_s14 = int_to_ptr.hbm [resolvable:$true] %s246_s14 }
   0xa   :  { %225 = vmatpush.bf16.msra.mxu3 %v355_v15  ;;  %v354_v18 = vld [vmem:[%s491_s2 + $0x68] sm:$0xff]  ;;  %v353_v20 = vld [vmem:[%s491_s2 + $0x60] sm:$0xff]  ;;  %v344_v21 = vld [vmem:[%s491_s2 + $0x18] sm:$0xff] }
   0xb   :  { %271 = vmatmul.msk.bf16.vlgmr.msra.gmra.mxu0 %vm46_vm0, %v16_v16  ;;  %v352_v22 = vld [vmem:[%s491_s2 + $0x58] sm:$0xff]  ;;  %v343_v23 = vld [vmem:[%s491_s2 + $0x10] sm:$0xff]  ;;  %v342_v25 = vld [vmem:[%s491_s2 + $0x8] sm:$0xff] }
   0xc   :  { %272 = vmatmul.msk.bf16.vlgmr.msra.gmra.mxu1 %vm46_vm0, %v16_v16  ;;  %v351_v24 = vld [vmem:[%s491_s2 + $0x50] sm:$0xff]  ;;  %v350_v26 = vld [vmem:[%s491_s2 + $0x48] sm:$0xff]  ;;  %v341_v27 = vld [vmem:[%s491_s2] sm:$0xff] }
   0xd   :  { %213 = vmatpush.bf16.msra.mxu2 %v346_v17  ;;  %v349_v28 = vld [vmem:[%s491_s2 + $0x40] sm:$0xff] }
   0xe   :  { %226 = vmatpush.bf16.msra.mxu3 %v354_v18  ;;  %v21_v29 = vld [vmem:[%s490_s1 + $0x20] sm:$0x11]  ;;  %s384_s1 = smov [#allocation2]  }
   0xf   :  { %v22_v30 = vunpack.c.l.bf16 %v21_v29  ;;  %v23_v31 = vunpack.c.h.bf16 %v21_v29  ;;  %v112_v44 = vld [vmem:[%s491_s2 + $0x80] sm:$0x1]  ;;  %s244_s11 = sshll.u32 %s384_s1, 4  ;;  %s245_s11 = int_to_ptr.vmem [resolvable:$true] %s244_s11 }
  0x10   :  { %v113_v45 = vunpack.c.l.bf16 %v112_v44 }
  0x11   :  { %214 = vmatpush.bf16.msra.mxu2 %v345_v19  ;;  %v24_v32 = vperm.slane %v22_v30, 0  ;;  %v25_v33 = vperm.slane %v23_v31, 0 }
  0x12   :  { %227 = vmatpush.bf16.msra.mxu3 %v353_v20  ;;  %v114_v46 = vperm.slane %v113_v45, 0 }
  0x15   :  { %215 = vmatpush.bf16.msra.mxu2 %v344_v21 }
  0x16   :  { %228 = vmatpush.bf16.msra.mxu3 %v352_v22 }
  0x19   :  { %216 = vmatpush.bf16.msra.mxu2 %v343_v23 }
  0x1a   :  { %229 = vmatpush.bf16.msra.mxu3 %v351_v24 }
  0x1d   :  { %217 = vmatpush.bf16.msra.mxu2 %v342_v25 }
  0x1e   :  { %230 = vmatpush.bf16.msra.mxu3 %v350_v26 }
  0x21   :  { %218 = vmatpush.bf16.msra.mxu2 %v341_v27 }
  0x22   :  { %231 = vmatpush.bf16.msra.mxu3 %v349_v28 }
  0x88   :  { %v59_v34 = vpop.f32.mrf.mxu0 }
  0x89   :  { %v60_v35 = vadd.f32 %v59_v34, %v24_v32  ;;  %v72_v36 = vpop.f32.mrf.mxu1 }
  0x8a   :  { %v73_v37 = vadd.f32 %v72_v36, %v25_v33 }
  0x8b   :  { %v76_v38 = vmax.f32 %v60_v35, 0.0 }
  0x8c   :  { %v77_v39 = vmax.f32 %v73_v37, 0.0 }
  0x8d   :  { %v78_v40 = vpack.c.bf16 %v76_v38, %v76_v38 }
  0x8e   :  { %v79_v41 = vpack.c.bf16 %v77_v39, %v77_v39 }
  0x8f   :  { %219 = vmatmul.bf16.vlgmr.msra.gmra.mxu2 %v78_v40 }
  0x90   :  { %232 = vmatmul.bf16.vlgmr.msra.gmra.mxu3 %v79_v41  ;;  %v61_v42 = vpop.f32.mrf.mxu0 }
  0x91   :  { %v74_v43 = vpop.f32.mrf.mxu1 }
 0x112   :  { %v220_v47 = vpop.f32.mrf.mxu2 }
 0x113   :  { %v221_v48 = vadd.f32 %v220_v47, %v114_v46  ;;  %v233_v49 = vpop.f32.mrf.mxu3 }
 0x115   :  { %v234_v50 = vadd.f32 %v233_v49, %v221_v48 }
 0x117   :  { %238 = vst.msk [vmem:[#allocation2] sm:$0x3] %vm237_vm1, %v234_v50 }
 0x118   :  { %249 = dma.vmem_to_hbm [thread:$0]  %s245_s11, 32, %s247_s14, [#allocation3]  }
 0x11a   :  { %v222_v51 = vpop.f32.mrf.mxu2 }
 0x11b   :  { %v235_v52 = vpop.f32.mrf.mxu3 }
 0x11c   :  { %382 = dma.done.wait [#allocation3], 32  }
 0x11d   :  { %383 = vsyncadd [#allocation3], 4294967264 }
 0x11e   :  { %254 = vsyncpa [#allocation3], 1 }

</bundles_post_ra>
